<compile_context>
chip_gen: v5e
topology: v5e:2x2
jax: 0.10.0
libtpu: 0.0.40
codegen_flags: <defaults>
</compile_context>

<pallas_src>
import jax
import jax.numpy as jnp
from jax.experimental import pallas as pl
from jax.experimental.pallas import tpu as pltpu

LANE = 128           # TPU lane width: output is padded to a multiple of this.
MAX_BATCH_TILE = 256 # fits the 256-wide MXU on v6e/v7x; harmless on v5e.


def _round_up(x, m):
    return ((x + m - 1) // m) * m


def mlp_kernel(x_ref, w1_ref, b1_ref, w2_ref, b2_ref, w3_ref, b3_ref, o_ref):
    x = x_ref[...]  # (TB, D_in) bf16

    # fc1 + ReLU  (bf16 operands, f32 accumulation, f32 epilogue)
    h1 = jnp.dot(x, w1_ref[...], preferred_element_type=jnp.float32) + b1_ref[...]
    h1 = jnp.maximum(h1, 0.0).astype(jnp.bfloat16)

    # fc2 + ReLU  (dropout p=0.3 is identity in inference mode)
    h2 = jnp.dot(h1, w2_ref[...], preferred_element_type=jnp.float32) + b2_ref[...]
    h2 = jnp.maximum(h2, 0.0).astype(jnp.bfloat16)
    # TODO(synk): training-mode dropout would use pltpu.prng_seed + prng_random_bits mask.

    # fc3 (logits). Output slab is lane-padded to 128 -> unmasked full-vreg stores.
    o_ref[...] = jnp.dot(h2, w3_ref[...], preferred_element_type=jnp.float32) + b3_ref[...]


def medium_sentiment_classifier(x, params):
    """x: (B, input_dim) f32. params: dict with (in, out)-layout weights, (1, out) biases."""
    w1, b1, w2, b2, w3, b3 = (
        params["w1"], params["b1"], params["w2"],
        params["b2"], params["w3"], params["b3"],
    )
    B, d_in = x.shape
    hidden = w1.shape[1]
    h2_dim = w2.shape[1]
    out_dim = w3.shape[1]

    # --- batch tiling (pad batch to a multiple of the tile) ---
    TB = min(MAX_BATCH_TILE, _round_up(B, 8))
    B_pad = _round_up(B, TB)
    if B_pad != B:
        x = jnp.pad(x, ((0, B_pad - B), (0, 0)))

    # --- lane-dense output: zero-pad fc3 columns to a multiple of 128 ---
    out_pad = _round_up(out_dim, LANE)
    if out_pad != out_dim:
        w3 = jnp.pad(w3, ((0, 0), (0, out_pad - out_dim)))
        b3 = jnp.pad(b3, ((0, 0), (0, out_pad - out_dim)))

    # --- dtypes: bf16 matmul operands, f32 biases ---
    x_bf = x.astype(jnp.bfloat16)
    w1_bf = w1.astype(jnp.bfloat16)
    w2_bf = w2.astype(jnp.bfloat16)
    w3_bf = w3.astype(jnp.bfloat16)
    b1_f = b1.astype(jnp.float32)
    b2_f = b2.astype(jnp.float32)
    b3_f = b3.astype(jnp.float32)

    grid = (B_pad // TB,)

    # Weights/biases: index_map always returns block 0 -> VMEM-resident, fetched once.
    resident = lambda shape: pl.BlockSpec(shape, lambda i: (0,) * len(shape))

    out = pl.pallas_call(
        mlp_kernel,
        out_shape=jax.ShapeDtypeStruct((B_pad, out_pad), jnp.float32),
        grid=grid,
        in_specs=[
            pl.BlockSpec((TB, d_in), lambda i: (i, 0)),        # x tiles stream
            resident((d_in, hidden)), resident((1, hidden)),   # fc1
            resident((hidden, h2_dim)), resident((1, h2_dim)),  # fc2
            resident((h2_dim, out_pad)), resident((1, out_pad)),  # fc3 (lane-padded)
        ],
        out_specs=pl.BlockSpec((TB, out_pad), lambda i: (i, 0)),
        compiler_params=pltpu.CompilerParams(
            dimension_semantics=("parallel",),  # v7x: shard batch tiles across both TCs
        ),
    )(x_bf, w1_bf, b1_f, w2_bf, b2_f, w3_bf, b3_f)

    return out[:B, :out_dim]


def init_params(key, input_dim, hidden_dim, output_dim):
    """Deterministic synthetic init. Weights stored as (in, out) (i.e. PyTorch W.T)."""
    ks = jax.random.split(key, 6)
    h2 = hidden_dim // 2
    scale = lambda fan_in: 1.0 / jnp.sqrt(jnp.float32(fan_in))
    return {
        "w1": jax.random.uniform(ks[0], (input_dim, hidden_dim), jnp.float32,
                                 -scale(input_dim), scale(input_dim)),
        "b1": jax.random.uniform(ks[1], (1, hidden_dim), jnp.float32,
                                 -scale(input_dim), scale(input_dim)),
        "w2": jax.random.uniform(ks[2], (hidden_dim, h2), jnp.float32,
                                 -scale(hidden_dim), scale(hidden_dim)),
        "b2": jax.random.uniform(ks[3], (1, h2), jnp.float32,
                                 -scale(hidden_dim), scale(hidden_dim)),
        "w3": jax.random.uniform(ks[4], (h2, output_dim), jnp.float32,
                                 -scale(h2), scale(h2)),
        "b3": jax.random.uniform(ks[5], (1, output_dim), jnp.float32,
                                 -scale(h2), scale(h2)),
    }


def reference_forward_bf16(x, p):
    """Matches the kernel numerics: bf16 operands, f32 accumulation, f32 epilogue."""
    xb = x.astype(jnp.bfloat16).astype(jnp.float32)
    w1 = p["w1"].astype(jnp.bfloat16).astype(jnp.float32)
    w2 = p["w2"].astype(jnp.bfloat16).astype(jnp.float32)
    w3 = p["w3"].astype(jnp.bfloat16).astype(jnp.float32)
    h1 = jnp.maximum(xb @ w1 + p["b1"], 0.0)
    h1 = h1.astype(jnp.bfloat16).astype(jnp.float32)
    h2 = jnp.maximum(h1 @ w2 + p["b2"], 0.0)
    h2 = h2.astype(jnp.bfloat16).astype(jnp.float32)
    return h2 @ w3 + p["b3"]


def reference_forward_f32(x, p):
    h1 = jnp.maximum(x @ p["w1"] + p["b1"], 0.0)
    h2 = jnp.maximum(h1 @ p["w2"] + p["b2"], 0.0)
    return h2 @ p["w3"] + p["b3"]


if __name__ == "__main__":
    key = jax.random.PRNGKey(0)
    k_in, k_param = jax.random.split(key)

    batch, input_dim, hidden_dim, output_dim = 8, 32, 32, 4
    x = jax.random.normal(k_in, (batch, input_dim), jnp.float32)
    params = init_params(k_param, input_dim, hidden_dim, output_dim)

    out = medium_sentiment_classifier(x, params)
    out = jax.block_until_ready(out)
    assert out.shape == (batch, output_dim)

    # Exact-numerics reference (same bf16 casts, f32 accumulation).
    ref_bf16 = reference_forward_bf16(x, params)
    assert jnp.allclose(out, ref_bf16, atol=2e-3, rtol=2e-3)

    # Looser check vs the pure-f32 PyTorch-equivalent forward.
    ref_f32 = reference_forward_f32(x, params)
    assert jnp.allclose(out, ref_f32, atol=5e-2, rtol=5e-2)

    print("KERNEL_OK")
</pallas_src>

<mosaic_0001>
module attributes {stable_mosaic.version = 11 : i64} {
  func.func @mlp_kernel(%arg0: i32, %arg1: memref<8x32xbf16, #tpu.memory_space<vmem>>, %arg2: memref<32x32xbf16, #tpu.memory_space<vmem>>, %arg3: memref<1x32xf32, #tpu.memory_space<vmem>>, %arg4: memref<32x16xbf16, #tpu.memory_space<vmem>>, %arg5: memref<1x16xf32, #tpu.memory_space<vmem>>, %arg6: memref<16x128xbf16, #tpu.memory_space<vmem>>, %arg7: memref<1x128xf32, #tpu.memory_space<vmem>>, %arg8: memref<8x128xf32, #tpu.memory_space<vmem>>) attributes {dimension_semantics = [#tpu.dimension_semantics<parallel>], iteration_bounds = array<i64: 1>, scalar_prefetch = 0 : i64, scratch_operands = 0 : i64, tpu.core_type = #tpu.core_type<tc>, window_params = [{transform_indices = @transform_0, window_bounds = array<i64: 8, 32>}, {pipeline_mode = #tpu.pipeline_mode<synchronous>, transform_indices = @transform_1, window_bounds = array<i64: 32, 32>}, {pipeline_mode = #tpu.pipeline_mode<synchronous>, transform_indices = @transform_2, window_bounds = array<i64: 1, 32>}, {pipeline_mode = #tpu.pipeline_mode<synchronous>, transform_indices = @transform_3, window_bounds = array<i64: 32, 16>}, {pipeline_mode = #tpu.pipeline_mode<synchronous>, transform_indices = @transform_4, window_bounds = array<i64: 1, 16>}, {pipeline_mode = #tpu.pipeline_mode<synchronous>, transform_indices = @transform_5, window_bounds = array<i64: 16, 128>}, {pipeline_mode = #tpu.pipeline_mode<synchronous>, transform_indices = @transform_6, window_bounds = array<i64: 1, 128>}, {transform_indices = @transform_7, window_bounds = array<i64: 8, 128>}]} {
    %c0 = arith.constant 0 : index
    %c0_0 = arith.constant 0 : index
    %0 = vector.load %arg1[%c0, %c0_0] : memref<8x32xbf16, #tpu.memory_space<vmem>>, vector<8x32xbf16>
    %c0_1 = arith.constant 0 : index
    %c0_2 = arith.constant 0 : index
    %1 = vector.load %arg2[%c0_1, %c0_2] : memref<32x32xbf16, #tpu.memory_space<vmem>>, vector<32x32xbf16>
    %cst = arith.constant dense<0.000000e+00> : vector<8x32xf32>
    %2 = tpu.matmul %0, %1, %cst {dimension_numbers = #tpu.dot_dimension_numbers<[1], [0], [0], [1], [0, 0, 1, 1], [], []>} : vector<8x32xbf16>, vector<32x32xbf16>, vector<8x32xf32> -> vector<8x32xf32>
    %c0_3 = arith.constant 0 : index
    %c0_4 = arith.constant 0 : index
    %3 = vector.load %arg3[%c0_3, %c0_4] : memref<1x32xf32, #tpu.memory_space<vmem>>, vector<1x32xf32>
    %4 = vector.broadcast %3 : vector<1x32xf32> to vector<8x32xf32>
    %5 = arith.addf %2, %4 : vector<8x32xf32>
    %cst_5 = arith.constant 0.000000e+00 : f32
    %6 = vector.broadcast %cst_5 : f32 to vector<8x32xf32>
    %7 = arith.maximumf %5, %6 : vector<8x32xf32>
    %8 = arith.truncf %7 : vector<8x32xf32> to vector<8x32xbf16>
    %c0_6 = arith.constant 0 : index
    %c0_7 = arith.constant 0 : index
    %9 = vector.load %arg4[%c0_6, %c0_7] : memref<32x16xbf16, #tpu.memory_space<vmem>>, vector<32x16xbf16>
    %cst_8 = arith.constant dense<0.000000e+00> : vector<8x16xf32>
    %10 = tpu.matmul %8, %9, %cst_8 {dimension_numbers = #tpu.dot_dimension_numbers<[1], [0], [0], [1], [0, 0, 1, 1], [], []>} : vector<8x32xbf16>, vector<32x16xbf16>, vector<8x16xf32> -> vector<8x16xf32>
    %c0_9 = arith.constant 0 : index
    %c0_10 = arith.constant 0 : index
    %11 = vector.load %arg5[%c0_9, %c0_10] : memref<1x16xf32, #tpu.memory_space<vmem>>, vector<1x16xf32>
    %12 = vector.broadcast %11 : vector<1x16xf32> to vector<8x16xf32>
    %13 = arith.addf %10, %12 : vector<8x16xf32>
    %cst_11 = arith.constant 0.000000e+00 : f32
    %14 = vector.broadcast %cst_11 : f32 to vector<8x16xf32>
    %15 = arith.maximumf %13, %14 : vector<8x16xf32>
    %16 = arith.truncf %15 : vector<8x16xf32> to vector<8x16xbf16>
    %c0_12 = arith.constant 0 : index
    %c0_13 = arith.constant 0 : index
    %17 = vector.load %arg6[%c0_12, %c0_13] : memref<16x128xbf16, #tpu.memory_space<vmem>>, vector<16x128xbf16>
    %cst_14 = arith.constant dense<0.000000e+00> : vector<8x128xf32>
    %18 = tpu.matmul %16, %17, %cst_14 {dimension_numbers = #tpu.dot_dimension_numbers<[1], [0], [0], [1], [0, 0, 1, 1], [], []>} : vector<8x16xbf16>, vector<16x128xbf16>, vector<8x128xf32> -> vector<8x128xf32>
    %c0_15 = arith.constant 0 : index
    %c0_16 = arith.constant 0 : index
    %19 = vector.load %arg7[%c0_15, %c0_16] : memref<1x128xf32, #tpu.memory_space<vmem>>, vector<1x128xf32>
    %20 = vector.broadcast %19 : vector<1x128xf32> to vector<8x128xf32>
    %21 = arith.addf %18, %20 : vector<8x128xf32>
    %c0_17 = arith.constant 0 : index
    %c0_18 = arith.constant 0 : index
    %22 = vector.load %arg8[%c0_17, %c0_18] : memref<8x128xf32, #tpu.memory_space<vmem>>, vector<8x128xf32>
    tpu.vector_store %arg8[%c0_17, %c0_18], %21 {strides = array<i32>} : memref<8x128xf32, #tpu.memory_space<vmem>>, vector<8x128xf32>,
    return
  }
  func.func @transform_0(%arg0: i32) -> (i32, i32) {
    %c0_i32 = arith.constant 0 : i32
    %c0_i32_0 = arith.constant 0 : i32
    return %arg0, %c0_i32 : i32, i32
  }
  func.func @transform_1(%arg0: i32) -> (i32, i32) {
    %c0_i32 = arith.constant 0 : i32
    %c0_i32_0 = arith.constant 0 : i32
    %c0_i32_1 = arith.constant 0 : i32
    return %c0_i32, %c0_i32_0 : i32, i32
  }
  func.func @transform_2(%arg0: i32) -> (i32, i32) {
    %c0_i32 = arith.constant 0 : i32
    %c0_i32_0 = arith.constant 0 : i32
    %c0_i32_1 = arith.constant 0 : i32
    return %c0_i32, %c0_i32_0 : i32, i32
  }
  func.func @transform_3(%arg0: i32) -> (i32, i32) {
    %c0_i32 = arith.constant 0 : i32
    %c0_i32_0 = arith.constant 0 : i32
    %c0_i32_1 = arith.constant 0 : i32
    return %c0_i32, %c0_i32_0 : i32, i32
  }
  func.func @transform_4(%arg0: i32) -> (i32, i32) {
    %c0_i32 = arith.constant 0 : i32
    %c0_i32_0 = arith.constant 0 : i32
    %c0_i32_1 = arith.constant 0 : i32
    return %c0_i32, %c0_i32_0 : i32, i32
  }
  func.func @transform_5(%arg0: i32) -> (i32, i32) {
    %c0_i32 = arith.constant 0 : i32
    %c0_i32_0 = arith.constant 0 : i32
    %c0_i32_1 = arith.constant 0 : i32
    return %c0_i32, %c0_i32_0 : i32, i32
  }
  func.func @transform_6(%arg0: i32) -> (i32, i32) {
    %c0_i32 = arith.constant 0 : i32
    %c0_i32_0 = arith.constant 0 : i32
    %c0_i32_1 = arith.constant 0 : i32
    return %c0_i32, %c0_i32_0 : i32, i32
  }
  func.func @transform_7(%arg0: i32) -> (i32, i32) {
    %c0_i32 = arith.constant 0 : i32
    %c0_i32_0 = arith.constant 0 : i32
    return %arg0, %c0_i32 : i32, i32
  }
}

</mosaic_0001>

<bundles_post_ra>
// kernel: tpu_custom_call.1
= control target key start
LH: loop header
LB: loop body
LE: loop exit
PB: predicated region body
PF: predicated region fallthrough
CT: control target
= control target key end

     0   :  { %12 = vsyncpa [#allocation3], 0  ;;  %s324_s0 = inlined_call_operand.hbm [shape: bf16[8,32], index: 0, kind: input, shape index: {}]   ;;  %s325_s1 = inlined_call_operand.vmem [shape: bf16[32,32], index: 1, kind: input, shape index: {}]   ;;  %s326_s2 = inlined_call_operand.vmem [shape: f32[1,32], index: 2, kind: input, shape index: {}]   ;;  %s327_s3 = inlined_call_operand.vmem [shape: bf16[32,16], index: 3, kind: input, shape index: {}]   ;;  %s328_s4 = inlined_call_operand.vmem [shape: f32[1,16], index: 4, kind: input, shape index: {}]   ;;  %s329_s5 = inlined_call_operand.vmem [shape: bf16[16,128], index: 5, kind: input, shape index: {}]   ;;  %s330_s6 = inlined_call_operand.vmem [shape: f32[1,128], index: 6, kind: input, shape index: {}]   ;;  %s331_s7 = inlined_call_operand.hbm [shape: f32[8,128], index: 7, kind: output, shape index: {}]  }
   0x1   :  { %13 = vsyncpa [#allocation4], 0  ;;  %s19_s26 = sshll.u32 %s324_s0, 4  ;;  %s252_s27 = smov [#allocation2]   ;;  %s20_s26 = int_to_ptr.hbm [resolvable:$true] %s19_s26 }
   0x2   :  { %s21_s28 = sshll.u32 %s252_s27, 4  ;;  %s22_s28 = int_to_ptr.vmem [resolvable:$true] %s21_s28 }
   0x3   :  { %24 = dma.hbm_to_vmem [thread:$0]  %s20_s26, 64, %s22_s28, [#allocation3]  }
   0x4   :  { %248 = dma.done.wait [#allocation3], 64  }
   0x5   :  { %249 = vsyncadd [#allocation3], 4294967232  ;;  %v191_v0 = vld [vmem:[%s325_s1 + $0x8] sm:$0xff]  ;;  %v190_v1 = vld [vmem:[%s325_s1] sm:$0xff]  ;;  %vm63_vm0 = vcmask 261120   ;;  %vm132_vm1 = vcmask 130048  }
   0x6   :  { %73 = vmatpush.bf16.msra.mxu0 %v191_v0  ;;  %v42_v2 = vld [vmem:[#allocation2] sm:$0xf]  ;;  %v193_v3 = vld [vmem:[%s327_s3 + $0x8] sm:$0xff]  ;;  %s253_s18 = smov [#allocation5]   ;;  %s157_s21 = sshll.u32 %s331_s7, 4  ;;  %s158_s21 = int_to_ptr.hbm [resolvable:$true] %s157_s21 }
   0x7   :  { %111 = vmatpush.bf16.msra.mxu1 %v193_v3  ;;  %v192_v4 = vld [vmem:[%s327_s3] sm:$0xff]  ;;  %s155_s19 = sshll.u32 %s253_s18, 4  ;;  %s156_s19 = int_to_ptr.vmem [resolvable:$true] %s155_s19 }
   0x8   :  { %v197_v5 = vld [vmem:[%s326_s2] ss:$0 sm:$0xff] }
   0x9   :  { %v194_v11 = vld [vmem:[%s329_s5] sm:$0xff] }
   0xa   :  { %74 = vmatpush.bf16.msra.mxu0 %v190_v1  ;;  %143 = vmatpush.bf16.msra.mxu2 %v194_v11  ;;  %v198_v12 = vld [vmem:[%s328_s4] ss:$0 sm:$0xff] }
   0xb   :  { %112 = vmatpush.bf16.msra.mxu1 %v192_v4  ;;  %v199_v18 = vld [vmem:[%s330_s6] ss:$0 sm:$0xff] }
   0xd   :  { %175 = vmatmul.msk.bf16.vlgmr.msra.gmra.mxu0 %vm63_vm0, %v42_v2 }
  0x8a   :  { %v76_v6 = vpop.f32.mrf.mxu0 }
  0x8b   :  { %v77_v7 = vadd.f32 %v197_v5, %v76_v6 }
  0x8d   :  { %v80_v8 = vmax.f32 %v77_v7, 0.0 }
  0x8f   :  { %v81_v9 = vpack.c.bf16 %v80_v8, %v80_v8 }
  0x91   :  { %184 = vmatmul.msk.bf16.vlgmr.msra.gmra.mxu1 %vm63_vm0, %v81_v9 }
  0x92   :  { %v78_v10 = vpop.f32.mrf.mxu0 }
 0x10e   :  { %v114_v13 = vpop.f32.mrf.mxu1 }
 0x10f   :  { %v115_v14 = vadd.f32 %v198_v12, %v114_v13 }
 0x111   :  { %v118_v15 = vmax.f32 %v115_v14, 0.0 }
 0x113   :  { %v119_v16 = vpack.c.bf16 %v118_v15, %v118_v15 }
 0x115   :  { %189 = vmatmul.msk.bf16.vlgmr.msra.gmra.mxu2 %vm132_vm1, %v119_v16 }
 0x116   :  { %v116_v17 = vpop.f32.mrf.mxu1 }
 0x198   :  { %v145_v19 = vpop.f32.mrf.mxu2 }
 0x199   :  { %v146_v20 = vadd.f32 %v199_v18, %v145_v19 }
 0x19b   :  { %149 = vst [vmem:[#allocation5] sm:$0xff] %v146_v20 }
 0x19c   :  { %160 = dma.vmem_to_hbm [thread:$0]  %s156_s19, 128, %s158_s21, [#allocation4]  }
 0x1a0   :  { %v147_v21 = vpop.f32.mrf.mxu2 }
 0x1a1   :  { %250 = dma.done.wait [#allocation4], 128  }
 0x1a2   :  { %251 = vsyncadd [#allocation4], 4294967168 }
 0x1a3   :  { %165 = vsyncpa [#allocation3], 1 }
 0x1a4   :  { %166 = vsyncpa [#allocation4], 1 }

</bundles_post_ra>
